<compile_context>
chip_gen: v6e
topology: v6e:2x2x1
jax: 0.10.0
libtpu: 0.0.40
codegen_flags: <defaults>
</compile_context>

<pallas_src>
import functools
import math

import jax
import jax.numpy as jnp
from jax import lax
from jax.experimental import pallas as pl
from jax.experimental.pallas import tpu as pltpu

LANES = 128
SMOOTH = 1e-6
LOG_SMOOTH = math.log(SMOOTH)
LOG_1M_SMOOTH = math.log1p(-SMOOTH)


def _int_pow(x, g):
    """x ** g for small non-negative integer g via repeated VPU multiplies."""
    if g == 0:
        return jnp.ones_like(x)
    out = x
    for _ in range(g - 1):
        out = out * x
    return out


def _repeat_axis1(t, reps):
    """[t, t, ..., t] (`reps` copies) along axis 1 using O(log reps) concats."""
    out, piece, r = None, t, reps
    while r:
        if r & 1:
            out = piece if out is None else jnp.concatenate([out, piece], axis=1)
        r >>= 1
        if r:
            piece = jnp.concatenate([piece, piece], axis=1)
    return out


def _focal_loss_elementwise(x, t, alpha, gamma):
    """Per-element focal loss, numerically mirroring the PyTorch forward."""
    # log(sigmoid(x)) = -softplus(-x); a single logaddexp feeds everything below.
    sp_neg = jnp.logaddexp(-x, 0.0)                           # softplus(-x)   (EUP)
    log_prob = jnp.clip(-sp_neg, LOG_SMOOTH, LOG_1M_SMOOTH)   # log(clamp(sigmoid(x)))
    softplus_x = x + sp_neg                                   # = -logsigmoid(-x)

    g = float(gamma)
    if g.is_integer() and 0 <= g <= 8:
        prob = jnp.exp(log_prob)                              # clipped prob    (EUP)
        pos_w = _int_pow(1.0 - prob, int(g))                  # (1 - p)^g  (VPU)
        neg_w = _int_pow(prob, int(g))                        # p^g        (VPU)
    else:
        # log(1 - clamp(sigmoid(x))) = clip(-softplus(x), ...): reuse the logs
        # already computed instead of jnp.power's exp(g*log(.)) pair.
        log_1m_prob = jnp.clip(-softplus_x, LOG_SMOOTH, LOG_1M_SMOOTH)
        pos_w = jnp.exp(g * log_1m_prob)
        neg_w = jnp.exp(g * log_prob)

    pos_val = pos_w * log_prob                                # enters with a minus sign
    neg_val = neg_w * softplus_x
    if float(alpha) != 1.0:
        neg_val = float(alpha) * neg_val
    # where-selects instead of (t==k).astype()*... mask-cast-multiply chains.
    # Select (not multiply) also makes garbage NaN/Inf in masked tails harmless.
    return jnp.where(t == 0.0, neg_val, 0.0) - jnp.where(t == 1.0, pos_val, 0.0)


def _focal_kernel(x_ref, t_ref, o_ref, *, alpha, gamma, c_rep,
                  n_total, n_block, s_total, s_block):
    x = x_ref[...].astype(jnp.float32)          # (bn, s_block, 128) logits
    t = t_ref[...].astype(jnp.float32)          # (bn, s_block / c_rep, 128) targets
    if c_rep > 1:
        # Broadcast the target across the channels folded into this block.
        t = _repeat_axis1(t, c_rep)

    loss = _focal_loss_elementwise(x, t, alpha, gamma)

    # Tail masks, compiled in only when a tail exists.  Out-of-bounds block
    # regions contain unspecified data; zero them with selects before reducing.
    if n_total % n_block:
        valid = n_total - pl.program_id(0) * n_block
        ids = lax.broadcasted_iota(jnp.int32, loss.shape, 0)
        loss = jnp.where(ids < valid, loss, 0.0)
    if s_total % s_block:
        valid = s_total - pl.program_id(1) * s_block
        ids = lax.broadcasted_iota(jnp.int32, loss.shape, 1)
        loss = jnp.where(ids < valid, loss, 0.0)

    # Lane-wise partial sum; the tiny cross-lane / cross-block reduction happens
    # in the wrapper.  Each grid step owns its own output row -> no accumulator.
    o_ref[...] = jnp.sum(loss, axis=(0, 1))[None, None, :]


def binary_focal_loss(output, target, *, alpha=1.0, gamma=2.0, reduction="mean",
                      block_rows=4096, vmem_limit_bytes=32 * 1024 * 1024):
    """Pallas implementation of BinaryFocalLoss.forward.

    output: (N, C, H, W) logits (f32 or bf16); target: (N, H, W) with values in {0, 1}.
    The reference module applies a final .mean() regardless of `reduction`, so a
    scalar mean over all N*C*H*W broadcast elements is returned.
    """
    assert reduction in ("none", "mean", "sum")
    # TODO(synk): tensor-valued alpha (mentioned in the module docstring) is not
    # supported; the reference forward only uses it as a scalar multiplier.
    n, ch, h, w = output.shape
    assert target.shape == (n, h, w)
    hw = h * w
    total = n * ch * hw                                    # mean denominator (pre-padding)

    # Sublane alignment of a non-full second-minor block dim depends on dtype packing.
    sub = {4: 8, 2: 16, 1: 32}.get(jnp.dtype(output.dtype).itemsize, 8)
    block_rows = max(sub, (int(block_rows) // sub) * sub)

    logits = output.reshape(n, ch, hw)                     # free reshape
    tgt = target
    if not jnp.issubdtype(tgt.dtype, jnp.floating):
        tgt = tgt.astype(jnp.float32)                      # tiny (N*H*W) cast
    tgt = tgt.reshape(n, hw)

    if hw % LANES != 0:
        # Fallback: pad H*W so it tiles into 128-lane rows.  Padded targets are -1,
        # so neither branch fires and the padded loss is exactly 0.
        pad = (-hw) % LANES
        logits = jnp.pad(logits, ((0, 0), (0, 0), (0, pad)))
        tgt = jnp.pad(tgt, ((0, 0), (0, pad)), constant_values=-1.0)
        hw += pad

    rows = hw // LANES                                     # sublane rows per channel plane
    s_total = ch * rows

    use_flat = rows <= block_rows
    c_rep = ch
    if use_flat and s_total > block_rows:
        # Fold as many whole channels as fit; a partial fold must keep the block's
        # second-minor dim sublane-aligned.
        c_rep = max(1, block_rows // rows)
        while c_rep > 1 and (c_rep * rows) % sub:
            c_rep -= 1
        if (c_rep * rows) % sub:
            use_flat = False                               # rows itself is unaligned

    if use_flat:
        # ---- Path A: logits viewed as (N, C*R, 128); whole channels per block. ----
        x_view = logits.reshape(n, s_total, LANES)         # free reshape
        t_view = tgt.reshape(n, rows, LANES)               # free reshape
        c_chunks = pl.cdiv(ch, c_rep)
        block_s = c_rep * rows
        block_n = max(1, min(n, block_rows // block_s))
        n_blocks = pl.cdiv(n, block_n)
        if n_blocks * c_chunks < 2:
            # v7x has 2 TensorCores: expose >= 2 parallel blocks whenever the
            # problem can be split.  Only triggers for single-block (tiny)
            # problems, so the cost on single-core v5e/v6e is negligible.
            if n >= 2:
                block_n = pl.cdiv(n, 2)
                n_blocks = pl.cdiv(n, block_n)
            elif ch >= 2 and (pl.cdiv(ch, 2) * rows) % sub == 0:
                c_rep = pl.cdiv(ch, 2)
                c_chunks = pl.cdiv(ch, c_rep)
                block_s = c_rep * rows

        grid = (n_blocks, c_chunks)
        num_out = n_blocks * c_chunks
        in_specs = [
            pl.BlockSpec((block_n, block_s, LANES), lambda i, j: (i, j, 0)),
            # Same target block for every channel chunk -> fetched once per i.
            pl.BlockSpec((block_n, rows, LANES), lambda i, j: (i, 0, 0)),
        ]
        out_specs = pl.BlockSpec((1, 1, LANES),
                                 lambda i, j, _c=c_chunks: (i * _c + j, 0, 0))
        dims = ("parallel", "parallel")
        kernel = functools.partial(
            _focal_kernel, alpha=float(alpha), gamma=float(gamma), c_rep=c_rep,
            n_total=n, n_block=block_n, s_total=s_total, s_block=block_s)
    else:
        # ---- Path B: huge channel planes; chunk rows, channels innermost so the ----
        # ---- pipeliner keeps the resident target block across the C steps.       ----
        x_view = logits.reshape(n * ch, rows, LANES)       # free reshape
        t_view = tgt.reshape(n, rows, LANES)               # free reshape
        block_r = min(rows, block_rows)
        r_chunks = pl.cdiv(rows, block_r)
        grid = (n, r_chunks, ch)
        num_out = n * r_chunks * ch
        in_specs = [
            pl.BlockSpec((1, block_r, LANES),
                         lambda i, r, c, _ch=ch: (i * _ch + c, r, 0)),
            pl.BlockSpec((1, block_r, LANES), lambda i, r, c: (i, r, 0)),
        ]
        out_specs = pl.BlockSpec(
            (1, 1, LANES),
            lambda i, r, c, _rc=r_chunks, _ch=ch: ((i * _rc + r) * _ch + c, 0, 0))
        dims = ("parallel", "parallel", "arbitrary")
        kernel = functools.partial(
            _focal_kernel, alpha=float(alpha), gamma=float(gamma), c_rep=1,
            n_total=1, n_block=1, s_total=rows, s_block=block_r)

    partials = pl.pallas_call(
        kernel,
        out_shape=jax.ShapeDtypeStruct((num_out, 1, LANES), jnp.float32),
        grid=grid,
        in_specs=in_specs,
        out_specs=out_specs,
        compiler_params=pltpu.CompilerParams(
            dimension_semantics=dims,
            vmem_limit_bytes=int(vmem_limit_bytes)),
    )(x_view, t_view)

    # Final (tiny) cross-lane / cross-block reduction + .mean()
    # (the reference module always applies .mean() regardless of `reduction`).
    return jnp.sum(partials) / jnp.float32(total)


def _reference(output, target, alpha=1.0, gamma=2.0):
    # Pure-JAX mirror of the PyTorch forward.
    prob = jax.nn.sigmoid(output)
    prob = jnp.clip(prob, SMOOTH, 1.0 - SMOOTH)
    t = target[:, None, :, :]
    pos_mask = (t == 1).astype(jnp.float32)
    neg_mask = (t == 0).astype(jnp.float32)
    pos_loss = -pos_mask * jnp.power(1.0 - prob, gamma) * jnp.log(prob)
    neg_loss = -alpha * neg_mask * jnp.power(prob, gamma) * jax.nn.log_sigmoid(-output)
    return (pos_loss + neg_loss).mean()


if __name__ == "__main__":
    key = jax.random.PRNGKey(0)
    k1, k2 = jax.random.split(key)

    N, C, H, W = 2, 4, 16, 16
    logits = jax.random.normal(k1, (N, C, H, W), dtype=jnp.float32) * 2.0
    target = jax.random.bernoulli(k2, 0.5, (N, H, W)).astype(jnp.float32)

    loss = binary_focal_loss(logits, target, alpha=1.0, gamma=2.0, reduction="mean")
    loss = jax.block_until_ready(loss)

    ref = _reference(logits, target, alpha=1.0, gamma=2.0)
    assert jnp.allclose(loss, ref, rtol=1e-4, atol=1e-6), (loss, ref)

    print("KERNEL_OK")
</pallas_src>

<mosaic_0001>
module attributes {stable_mosaic.version = 11 : i64} {
  func.func @_focal_kernel(%arg0: i32, %arg1: i32, %arg2: memref<1x8x128xf32, #tpu.memory_space<vmem>>, %arg3: memref<1x2x128xf32, #tpu.memory_space<vmem>>, %arg4: memref<1x1x128xf32, #tpu.memory_space<vmem>>) attributes {dimension_semantics = [#tpu.dimension_semantics<parallel>, #tpu.dimension_semantics<parallel>], iteration_bounds = array<i64: 2, 1>, scalar_prefetch = 0 : i64, scratch_operands = 0 : i64, tpu.core_type = #tpu.core_type<tc>, window_params = [{transform_indices = @transform_0, window_bounds = array<i64: 1, 8, 128>}, {transform_indices = @transform_1, window_bounds = array<i64: 1, 2, 128>}, {transform_indices = @transform_2, window_bounds = array<i64: 1, 1, 128>}]} {
    %c0 = arith.constant 0 : index
    %c0_0 = arith.constant 0 : index
    %c0_1 = arith.constant 0 : index
    %0 = vector.load %arg2[%c0, %c0_0, %c0_1] : memref<1x8x128xf32, #tpu.memory_space<vmem>>, vector<1x8x128xf32>
    %c0_2 = arith.constant 0 : index
    %c0_3 = arith.constant 0 : index
    %c0_4 = arith.constant 0 : index
    %1 = vector.load %arg3[%c0_2, %c0_3, %c0_4] : memref<1x2x128xf32, #tpu.memory_space<vmem>>, vector<1x2x128xf32>
    %2 = tpu.concatenate %1, %1 in 1 : vector<1x2x128xf32>, vector<1x2x128xf32> -> vector<1x4x128xf32>
    %3 = tpu.concatenate %2, %2 in 1 : vector<1x4x128xf32>, vector<1x4x128xf32> -> vector<1x8x128xf32>
    %cst = arith.constant 0.000000e+00 : f32
    %4 = vector.broadcast %cst : f32 to vector<1x8x128xf32>
    %5 = arith.subf %4, %0 : vector<1x8x128xf32>
    %cst_5 = arith.constant 0.000000e+00 : f32
    %6 = vector.broadcast %cst_5 : f32 to vector<1x8x128xf32>
    %7 = arith.maximumf %5, %6 : vector<1x8x128xf32>
    %8 = vector.broadcast %cst_5 : f32 to vector<1x8x128xf32>
    %9 = arith.subf %5, %8 : vector<1x8x128xf32>
    %10 = arith.cmpf one, %9, %9 : vector<1x8x128xf32>
    %11 = vector.broadcast %cst_5 : f32 to vector<1x8x128xf32>
    %12 = arith.addf %5, %11 : vector<1x8x128xf32>
    %13 = math.absf %9 : vector<1x8x128xf32>
    %cst_6 = arith.constant 0.000000e+00 : f32
    %14 = vector.broadcast %cst_6 : f32 to vector<1x8x128xf32>
    %15 = arith.subf %14, %13 : vector<1x8x128xf32>
    %16 = math.exp %15 : vector<1x8x128xf32>
    %17 = math.log1p %16 : vector<1x8x128xf32>
    %18 = arith.addf %7, %17 : vector<1x8x128xf32>
    %19 = arith.select %10, %12, %18 : vector<1x8x128xi1>, vector<1x8x128xf32>
    %cst_7 = arith.constant 0.000000e+00 : f32
    %20 = vector.broadcast %cst_7 : f32 to vector<1x8x128xf32>
    %21 = arith.subf %20, %19 : vector<1x8x128xf32>
    %cst_8 = arith.constant -13.8155107 : f32
    %cst_9 = arith.constant -1.00000045E-6 : f32
    %22 = vector.broadcast %cst_8 : f32 to vector<1x8x128xf32>
    %23 = arith.maximumf %22, %21 : vector<1x8x128xf32>
    %24 = vector.broadcast %cst_9 : f32 to vector<1x8x128xf32>
    %25 = arith.minimumf %24, %23 : vector<1x8x128xf32>
    %26 = arith.addf %0, %19 : vector<1x8x128xf32>
    %27 = math.exp %25 : vector<1x8x128xf32>
    %cst_10 = arith.constant 1.000000e+00 : f32
    %28 = vector.broadcast %cst_10 : f32 to vector<1x8x128xf32>
    %29 = arith.subf %28, %27 : vector<1x8x128xf32>
    %30 = arith.mulf %29, %29 : vector<1x8x128xf32>
    %31 = arith.mulf %27, %27 : vector<1x8x128xf32>
    %32 = arith.mulf %30, %25 : vector<1x8x128xf32>
    %33 = arith.mulf %31, %26 : vector<1x8x128xf32>
    %cst_11 = arith.constant 0.000000e+00 : f32
    %34 = vector.broadcast %cst_11 : f32 to vector<1x8x128xf32>
    %35 = arith.cmpf oeq, %3, %34 : vector<1x8x128xf32>
    %cst_12 = arith.constant 0.000000e+00 : f32
    %36 = vector.broadcast %cst_12 : f32 to vector<1x8x128xf32>
    %37 = arith.select %35, %33, %36 : vector<1x8x128xi1>, vector<1x8x128xf32>
    %cst_13 = arith.constant 1.000000e+00 : f32
    %38 = vector.broadcast %cst_13 : f32 to vector<1x8x128xf32>
    %39 = arith.cmpf oeq, %3, %38 : vector<1x8x128xf32>
    %cst_14 = arith.constant 0.000000e+00 : f32
    %40 = vector.broadcast %cst_14 : f32 to vector<1x8x128xf32>
    %41 = arith.select %39, %32, %40 : vector<1x8x128xi1>, vector<1x8x128xf32>
    %42 = arith.subf %37, %41 : vector<1x8x128xf32>
    %cst_15 = arith.constant dense<0.000000e+00> : vector<128xf32>
    %43 = vector.multi_reduction <add>, %42, %cst_15 [0, 1] : vector<1x8x128xf32> to vector<128xf32>
    %44 = vector.shape_cast %43 : vector<128xf32> to vector<1x1x128xf32>
    %c0_16 = arith.constant 0 : index
    %c0_17 = arith.constant 0 : index
    %c0_18 = arith.constant 0 : index
    %45 = vector.load %arg4[%c0_16, %c0_17, %c0_18] : memref<1x1x128xf32, #tpu.memory_space<vmem>>, vector<1x1x128xf32>
    tpu.vector_store %arg4[%c0_16, %c0_17, %c0_18], %44 {strides = array<i32>} : memref<1x1x128xf32, #tpu.memory_space<vmem>>, vector<1x1x128xf32>,
    return
  }
  func.func @transform_0(%arg0: i32, %arg1: i32) -> (i32, i32, i32) {
    %c0_i32 = arith.constant 0 : i32
    %c0_i32_0 = arith.constant 0 : i32
    return %arg0, %arg1, %c0_i32 : i32, i32, i32
  }
  func.func @transform_1(%arg0: i32, %arg1: i32) -> (i32, i32, i32) {
    %c0_i32 = arith.constant 0 : i32
    %c0_i32_0 = arith.constant 0 : i32
    %c0_i32_1 = arith.constant 0 : i32
    return %arg0, %c0_i32, %c0_i32_0 : i32, i32, i32
  }
  func.func @transform_2(%arg0: i32, %arg1: i32) -> (i32, i32, i32) {
    %c1_i32 = arith.constant 1 : i32
    %0 = arith.muli %arg0, %c1_i32 : i32
    %1 = arith.addi %0, %arg1 : i32
    %c0_i32 = arith.constant 0 : i32
    %c0_i32_0 = arith.constant 0 : i32
    %c0_i32_1 = arith.constant 0 : i32
    return %1, %c0_i32, %c0_i32_0 : i32, i32, i32
  }
}

</mosaic_0001>

<bundles_post_ra>
// kernel: tpu_custom_call.1
= control target key start
LH: loop header
LB: loop body
LE: loop exit
PB: predicated region body
PF: predicated region fallthrough
CT: control target
= control target key end

     0   :  { %7 = vsyncpa [#allocation3], 0  ;;  %s792_s0 = inlined_call_operand.hbm [shape: f32[2,8,128], index: 0, kind: input, shape index: {}]   ;;  %s793_s1 = inlined_call_operand.hbm [shape: f32[2,2,128], index: 1, kind: input, shape index: {}]   ;;  %s794_s2 = inlined_call_operand.hbm [shape: f32[2,1,128], index: 2, kind: output, shape index: {}]  }
   0x1   :  { %9 = vsyncpa [#allocation3 + $0x1], 0 }
   0x2   :  { %10 = vsyncpa [#allocation6], 0 }
   0x3   :  { %12 = vsyncpa [#allocation6 + $0x1], 0 }
   0x4   :  { %13 = vsyncpa [#allocation4], 0 }
   0x5   :  { %15 = vsyncpa [#allocation4 + $0x1], 0  ;;  %s627_s9 = smov 0   ;;  %s629_s10 = smov 0  }
   0x6   :  { %s631_s11 = smov 0   ;;  %s633_s12 = smov 0  }
   0x7   :  { %s635_s13 = smov 0   ;;  %s637_s14 = smov 0  }
   0x8 LB: > { %s380_s15 = sadd.s32 4294967295, %s607_s14   ;;  %s381_s16 = sadd.s32 4294967294, %s607_s14   ;;  %s607_s14 = sphi %s637_s14, %s21_s14   ;;  %s603_s13 = sphi %s635_s13, %s806_s13   ;;  %s599_s12 = sphi %s633_s12, %s805_s12   ;;  %s595_s11 = sphi %s631_s11, %s804_s11   ;;  %s591_s10 = sphi %s629_s10, %s803_s10   ;;  %s587_s9 = sphi %s627_s9, %s802_s9  }
   0x9   : > { %s33_s17 = sadd.s32 1, %s603_s13  ;;  %s42_s18 = sadd.s32 1, %s595_s11 }
   0xa   : > { %p35_p0 = scmp.ge.s32.totalorder %s33_s17, 2  ;;  %p49_p1 = scmp.ne.s32.totalorder %s595_s11, %s591_s10 }
   0xb   : > { %p50_p2 = scmp.eq.s32.totalorder %s607_s14, 0  ;;  %p55_p3 = scmp.ne.s32.totalorder %s591_s10, %s587_s9 }
   0xc   : > { %s808_s17 = smov (%p35_p0, %s33_s17), 0  ;;  %p56_p5 = scmp.eq.s32.totalorder %s380_s15, 0 }
   0xd   : > { %p668_p4 = por %p50_p2, %p49_p1  ;;  %s37_s20 = ssub.s32 %s603_s13, %s808_s17 }
   0xe   : > { %p107_p6 = scmp.eq.s32.totalorder %s380_s15, 1  ;;  %p40_p7 = scmp.eq.s32.totalorder %s37_s20, 0 }
   0xf   : > { %p674_p8 = por %p56_p5, %p55_p3  ;;  %p113_p10 = scmp.eq.s32.totalorder %s381_s16, 1 }
  0x10   : > { %p678_p9 = por %p107_p6, %p49_p1  ;;  %p411_p13 = scmp.lt.s32.totalorder %s607_s14, 2 }
  0x11   : > { %s683_s23 = scalar_select %p40_p7, %s595_s11, %s42_s18  }
  0x12   : > { %p685_p11 = por %p113_p10, %p55_p3  ;;  %s692_s25 = sand.u32 1, %s595_s11  }
  0x13   : > { %s384_s26 = sshll.u32 %s692_s25, 3  ;;  %s385_s27 = sshll.u32 %s603_s13, 7 }
  0x14   : > { %s143_s30 = scalar_lea.hbm %s792_s0, %s385_s27  ;;  %s137_s3 = scalar_lea.vmem [#allocation2], %s384_s26 }
  0x15   : > { %s145_s4 = sshll.u32 %s137_s3, 4  ;;  %p701_p0 = pnand %p411_p13, %p668_p4  ;;  %s146_s4 = int_to_ptr.vmem [resolvable:$true] %s145_s4 }
  0x16   : > { %p388_p1 = scmp.ge.s32.totalorder %s607_s14, 1  ;;  %p168_p2 = scmp.lt.s32.totalorder %s607_s14, 3 }
  0x17   : > { %s134_s6 = scalar_lea.sflag [#allocation3], %s692_s25  ;;  %p469_p3 = pneg %p701_p0 }
  0x18   : > { %s480_s7 = scalar_lea.vmem %s146_s4, 128  ;;  %s609_s8 = smov [#allocation2]  }
  0x19   : > { %p481_p5 = scmp.ne.s32.totalorder %s146_s4, %s480_s7  ;;  %s485_s15 = sshll.u32 %s609_s8, 4  ;;  %s486_s15 = int_to_ptr.vmem [resolvable:$false] %s485_s15 }
  0x1a   : > { %s487_s16 = scalar_lea.vmem %s486_s15, 256  ;;  %p488_p4 = scmp.lt.s32.totalorder %s146_s4, %s486_s15 }
  0x1b   : > { %p483_p6 = pnand %p481_p5, %p469_p3  ;;  %p489_p10 = scmp.lt.s32.totalorder %s487_s16, %s480_s7 }
  0x1d   : > { %p484_p7 = pneg %p483_p6  ;;  %p490_p13 = por %p489_p10, %p488_p4 }
  0x1f   : > { %p491_p12 = pnand %p490_p13, %p484_p7 }
  0x21   : > { %494 = shalt.err (!%p491_p12)
}
  0x22   : > { %403 = dma.hbm_to_vmem [thread:$0]  (!%p701_p0), %s143_s30, 128, %s146_s4, %s134_s6  }
  0x23   : > { %p719_p5 = pnand %p388_p1, %p168_p2  ;;  %s386_s19 = sshll.u32 %s692_s25, 1 }
  0x24   : > { %s387_s20 = sshll.u32 %s603_s13, 5  ;;  %s156_s29 = scalar_lea.vmem [#allocation5], %s386_s19 }
  0x25   : > { %s161_s28 = scalar_lea.hbm %s793_s1, %s387_s20  ;;  %s163_s3 = sshll.u32 %s156_s29, 4  ;;  %s164_s3 = int_to_ptr.vmem [resolvable:$true] %s163_s3 }
  0x26   : > { %s153_s7 = scalar_lea.sflag [#allocation6], %s692_s25  ;;  %s508_s8 = scalar_lea.vmem %s164_s3, 32 }
  0x27   : > { %p509_p12 = scmp.ne.s32.totalorder %s164_s3, %s508_s8  ;;  %s610_s30 = smov [#allocation5]  }
  0x28   : > { %s513_s4 = sshll.u32 %s610_s30, 4  ;;  %s514_s4 = int_to_ptr.vmem [resolvable:$false] %s513_s4 }
  0x29   : > { %p511_p6 = pnand %p509_p12, %p469_p3  ;;  %s515_s6 = scalar_lea.vmem %s514_s4, 64 }
  0x2a   : > { %p516_p1 = scmp.lt.s32.totalorder %s164_s3, %s514_s4  ;;  %p517_p2 = scmp.lt.s32.totalorder %s515_s6, %s508_s8 }
  0x2b   : > { %p512_p7 = pneg %p511_p6 }
  0x2c   : > { %p518_p4 = por %p517_p2, %p516_p1 }
  0x2e   : > { %p519_p10 = pnand %p518_p4, %p512_p7 }
  0x30   : > { %522 = shalt.err (!%p519_p10)
}
  0x31   : > { %406 = dma.hbm_to_vmem [thread:$0]  (!%p701_p0), %s161_s28, 32, %s164_s3, %s153_s7  }
  0x32   : > { %172 = sbr.rel (%p719_p5) target bundleno = 160 (0xa0), region = 28  ;;  %s737_s25 = sand.u32 (!%p719_p5), 1, %s591_s10  }
  0x33   : > { %s389_s15 = sshll.u32 (!%p719_p5), %s737_s25, 3  ;;  %s175_s16 = scalar_lea.sflag (!%p719_p5), [#allocation3], %s737_s25 }
  0x34   : > { %s178_s19 = scalar_lea.vmem (!%p719_p5), [#allocation2], %s389_s15 }
  0x37   : > { %574 = dma.done.wait (%p674_p8), %s175_s16, 128  }
  0x38   : > { %576 = vsyncadd (%p674_p8), %s175_s16, 4294967168  ;;  %s390_s5 = sshll.u32 %s737_s25, 1  ;;  %s184_s18 = scalar_lea.sflag [#allocation6], %s737_s25 }
  0x39   : > { %s187_s20 = scalar_lea.vmem [#allocation5], %s390_s5 }
  0x3a   : > { %578 = dma.done.wait (%p674_p8), %s184_s18, 32  }
  0x3b   : > { %580 = vsyncadd (%p674_p8), %s184_s18, 4294967264  ;;  %v213_v0 = vld [vmem:[%s178_s19] sm:$0xff]  ;;  %v214_v20 = vld [vmem:[%s187_s20] sm:$0x3]  ;;  %vm218_vm2 = vcmask 1041408   ;;  %vm223_vm3 = vcmask 1043456  }
  0x3c   : > { %v225_v1 = vsub.f32 0.0, %v213_v0  ;;  %v216_v22 = vrot.slane %v214_v20, 6  ;;  %s211_s21 = scalar_lea.vmem [#allocation7], %s737_s25  ;;  %s391_s27 = sshll.u32 %s599_s12, 4 }
  0x3d   : > { %s281_s26 = sshll.u32 %s211_s21, 4  ;;  %s279_s3 = scalar_lea.hbm %s794_s2, %s391_s27  ;;  %s282_s26 = int_to_ptr.vmem [resolvable:$true] %s281_s26 }
  0x3e   : > { %v229_v2 = vand.u32 2147483647, %v225_v1  ;;  %v226_v12 = vmax.f32 %v225_v1, 0.0  ;;  %vm227_vm1 = vcmp.ne.f32.partialorder %v225_v1, %v225_v1  ;;  %v219_v23 = vsel %vm218_vm2, %v214_v20, %v216_v22  ;;  %s268_s7 = scalar_lea.sflag [#allocation4], %s737_s25  ;;  %s523_s8 = scalar_lea.vmem %s282_s26, 16 }
  0x3f   : > { %v221_v24 = vrot.slane %v219_v23, 4  ;;  %p524_p8 = scmp.ne.s32.totalorder %s282_s26, %s523_s8  ;;  %s611_s30 = smov [#allocation7]  }
  0x40   : > { %v230_v3 = vsub.f32 0.0, %v229_v2  ;;  %s527_s4 = sshll.u32 %s611_s30, 4  ;;  %s528_s4 = int_to_ptr.vmem [resolvable:$false] %s527_s4 }
  0x41   : > { %v224_v25 = vsel %vm223_vm3, %v219_v23, %v221_v24  ;;  %p525_p0 = pnand %p524_p8, %p678_p9  ;;  %s529_s6 = scalar_lea.vmem %s528_s4, 32 }
  0x42   : > { %v231_v4 = vmul.f32 1.442695, %v230_v3  ;;  %vm255_vm4 = vcmp.eq.f32.partialorder %v224_v25, 0.0  ;;  %vm257_vm5 = vcmp.eq.f32.partialorder %v224_v25, 1.0  ;;  %p530_p13 = scmp.lt.s32.totalorder %s282_s26, %s528_s4  ;;  %p531_p5 = scmp.lt.s32.totalorder %s529_s6, %s523_s8 }
  0x43   : > { %p526_p3 = pneg %p525_p0 }
  0x44   : > { %461 = vpow2.f32 %v231_v4  ;;  %p532_p12 = por %p531_p5, %p530_p13 }
  0x46   : > { %p533_p6 = pnand %p532_p12, %p526_p3 }
  0x51   : > { %v462_v5 = vpop.eup %461 }
  0x52   : > { %v233_v6 = vadd.f32 1.0, %v462_v5  ;;  %v236_v7 = vmul.f32 -0.5, %v462_v5  ;;  %v239_v9 = vand.u32 2147483647, %v462_v5 }
  0x54   : > { %463 = vlog2.f32 %v233_v6  ;;  %v237_v8 = vadd.f32 1.0, %v236_v7  ;;  %vm240_vm0 = vcmp.lt.f32.partialorder %v239_v9, 0.0004427343 }
  0x56   : > { %v238_v10 = vmul.f32 %v462_v5, %v237_v8 }
  0x61   : > { %v464_v11 = vpop.eup %463 }
  0x62   : > { %v235_v13 = vmul.f32 0.6931472, %v464_v11 }
  0x64   : > { %v241_v14 = vsel %vm240_vm0, %v238_v10, %v235_v13 }
  0x65   : > { %v242_v15 = vadd.f32 %v241_v14, %v226_v12 }
  0x67   : > { %v243_v16 = vsel %vm227_vm1, %v225_v1, %v242_v15 }
  0x68   : > { %v244_v17 = vsub.f32 0.0, %v243_v16  ;;  %v247_v26 = vadd.f32 %v243_v16, %v213_v0 }
  0x6a   : > { %v245_v18 = vmax.f32 %v244_v17, -13.815511 }
  0x6c   : > { %v246_v19 = vmin.f32 %v245_v18, -1.0000005e-06 }
  0x6e   : > { %v248_v21 = vmul.f32 1.442695, %v246_v19 }
  0x70   : > { %465 = vpow2.f32 %v248_v21 }
  0x7d   : > { %v466_v27 = vpop.eup %465 }
  0x7e   : > { %v250_v28 = vsub.f32 1.0, %v466_v27  ;;  %v252_v29 = vmul.f32 %v466_v27, %v466_v27 }
  0x80   : > { %v251_v30 = vmul.f32 %v250_v28, %v250_v28  ;;  %v254_v31 = vmul.f32 %v252_v29, %v247_v26 }
  0x82   : > { %v253_v32 = vmul.f32 %v251_v30, %v246_v19  ;;  %v256_v33 = vsel %vm255_vm4, %v254_v31, 0.0 }
  0x84   : > { %v258_v34 = vsel %vm257_vm5, %v253_v32, 0.0 }
  0x85   : > { %v259_v35 = vsub.f32 %v256_v33, %v258_v34 }
  0x87   : > { %v260_v36 = vrot.slane %v259_v35, 4 }
  0x89   : > { %v261_v37 = vadd.f32 %v260_v36, %v259_v35 }
  0x8b   : > { %v262_v38 = vrot.slane %v261_v37, 2 }
  0x8d   : > { %v263_v39 = vadd.f32 %v262_v38, %v261_v37 }
  0x8f   : > { %v264_v40 = vrot.slane %v263_v39, 1 }
  0x91   : > { %v265_v41 = vadd.f32 %v264_v40, %v263_v39 }
  0x93   : > { %266 = vst [vmem:[%s211_s21] sm:$0x1] %v265_v41 }
  0x94   : > { %536 = shalt.err (!%p533_p6)
}
  0x95   : > { %s537_s12 = scalar_lea.hbm %s279_s3, 16  ;;  %s541_s16 = scalar_lea.hbm %s794_s2, 32 }
  0x96   : > { %p538_p7 = scmp.ne.s32.totalorder %s279_s3, %s537_s12  ;;  %p542_p4 = scmp.lt.s32.totalorder %s279_s3, %s794_s2 }
  0x97   : > { %p543_p10 = scmp.lt.s32.totalorder %s541_s16, %s537_s12 }
  0x98   : > { %p539_p1 = pnand %p538_p7, %p678_p9 }
  0x99   : > { %p544_p8 = por %p543_p10, %p542_p4 }
  0x9a   : > { %p540_p2 = pneg %p539_p1 }
  0x9c   : > { %p545_p0 = pnand %p544_p8, %p540_p2 }
  0x9e   : > { %548 = shalt.err (!%p545_p0)
}
  0x9f   : > { %398 = dma.vmem_to_hbm [thread:$0]  (%p678_p9), %s282_s26, 16, %s279_s3, %s268_s7  }
  0xa0 PF: > { %s293_s18 = sand.u32 1, %s587_s9   ;;  %p801_p3 = scmp.ge.s32.totalorder %s607_s14, 2 }
  0xa1   : > { %s294_s20 = scalar_lea.sflag [#allocation4], %s293_s18 }
  0xa2   : > { %p408_p13 = pnand %p801_p3, %p685_p11 }
  0xa4   : > { %p409_p5 = pneg %p408_p13 }
  0xa6   : > { %582 = dma.done.wait (%p409_p5), %s294_s20, 16  }
  0xa7   : > { %584 = vsyncadd (%p409_p5), %s294_s20, 4294967280  ;;  %s21_s14 = sadd.s32 1, %s607_s14   ;;  %s802_s9 = smov %s591_s10 }
  0xa8   : > { %p18_p12 = scmp.ge.s32.totalorder %s21_s14, 4   ;;  %s803_s10 = smov %s595_s11 }
  0xa9   : > { %s804_s11 = smov %s683_s23  ;;  %s805_s12 = smov %s603_s13 }
  0xaa   : > { %s806_s13 = smov %s808_s17  ;;  %20 = sbr.rel (!%p18_p12) target bundleno = 8 (0x8), region = 86 }
  0xaf   :  { %298 = vsyncpa [#allocation3], 1 }
  0xb0   :  { %300 = vsyncpa [#allocation3 + $0x1], 1 }
  0xb1   :  { %301 = vsyncpa [#allocation6], 1 }
  0xb2   :  { %303 = vsyncpa [#allocation6 + $0x1], 1 }
  0xb3   :  { %304 = vsyncpa [#allocation4], 1 }
  0xb4   :  { %306 = vsyncpa [#allocation4 + $0x1], 1 }

</bundles_post_ra>
